<compile_context>
chip_gen: v7x
topology: tpu7x:2x2x1
jax: 0.10.0
libtpu: 0.0.40
codegen_flags: <defaults>
</compile_context>

<pallas_src>
import math

import numpy as np
import jax
import jax.numpy as jnp
from jax.experimental import pallas as pl
from jax.experimental.pallas import tpu as pltpu


def _expand_kernel(perm_ref, x_ref, o_ref):
    """One (batch, row-tile) block.

    perm_ref : (K, K)            constant 0/1 crossbar, resident in VMEM
    x_ref    : (1, s*s, T, g*W)  plane k = i*s + j, lane = r*W + w (r = row in fold)
    o_ref    : (1, T, K)         lane = r*(s*s*W) + i*(s*W) + w*s + j
    """
    ss = x_ref.shape[1]                      # s*s (static)
    mm = perm_ref.dtype
    # One lane-concat of the s*s planes -> (T, K) left operand.
    lhs = jnp.concatenate([x_ref[0, k] for k in range(ss)], axis=-1)
    if lhs.dtype != mm:
        # TODO(synk): integer inputs are exact only up to 2**24 in magnitude.
        lhs = lhs.astype(mm)
    # Single MXU crossbar: exact pass-through (each output column has exactly
    # one 1.0 weight), already lane-dense for one unmasked full-width store.
    out = jnp.dot(lhs, perm_ref[...], preferred_element_type=mm)
    o_ref[0] = out.astype(o_ref.dtype)


def _round_up(x, m):
    return (x + m - 1) // m * m


def _largest_divisor(n, limit, multiple_of):
    """Largest d <= limit with n % d == 0 and d % multiple_of == 0 (or None)."""
    limit = max(0, min(n, limit))
    for d in range(limit, 0, -1):
        if n % d == 0 and d % multiple_of == 0:
            return d
    return None


def _choose_fold(h, w, s, mm_itemsize, perm_cap_bytes):
    """Rows folded into the lane axis so the output lane width is 128-aligned."""
    g = 128 // math.gcd(128, s * s * w)      # smallest g with (s*s*g*w) % 128 == 0
    k = s * s * g * w
    if h % g == 0 and k * k * mm_itemsize <= perm_cap_bytes:
        return g
    # TODO(synk): awkward H/W (or huge W) falls back to g=1; output stores may
    # then be lane-masked and the crossbar may not fit the cap for very wide W.
    return 1


def _choose_row_tile(rows, sub, max_rows, batch, min_steps=4):
    """Largest sub-aligned divisor of `rows` under the VMEM budget; split further
    (staying sub-aligned) if the grid would have too few steps for megacore."""
    t = _largest_divisor(rows, max_rows, sub)
    if t is None:
        t = rows                             # full axis: always a legal block
    if batch * (rows // t) < min_steps:
        want = (min_steps + batch - 1) // batch
        cap = max(1, rows // want)
        t2 = _largest_divisor(rows, cap, sub)
        if t2 is not None:
            t = t2
    return t


def expand(x, gain=2, *, block_bytes=4 << 20, perm_cap_bytes=4 << 20):
    """Pallas equivalent of Expand(gain).forward(x), x in NCHW."""
    b, c, h, w = x.shape
    s = int(gain)
    assert c % (s * s) == 0, "channels must be divisible by gain**2"
    c2 = c // (s * s)

    # Matmul dtype: keep f32 / bf16 native on the MXU; promote anything else.
    if x.dtype == jnp.bfloat16:
        mm_dtype = jnp.bfloat16
    else:
        mm_dtype = jnp.float32               # TODO(synk): ints exact only to 2**24
    mm_it = jnp.dtype(mm_dtype).itemsize
    x_it = x.dtype.itemsize
    sub = max(8, 32 // x_it)                 # sublane tile: 8 f32, 16 bf16, 32 int8

    g = _choose_fold(h, w, s, mm_it, perm_cap_bytes)
    hg = h // g
    lin = g * w                              # input lane width per (i, j) plane
    K = s * s * lin                          # output lane width == matmul K == N
    rows = c2 * hg                           # independent (channel-group, row-group) rows

    # VMEM bytes per row with honest lane padding (input lanes pad toward 128).
    in_row = s * s * _round_up(lin, 128) * x_it
    out_row = _round_up(K, 128) * x_it
    max_rows = max(1, block_bytes // (in_row + out_row))
    T = _choose_row_tile(rows, sub, max_rows, b)

    # Build the 0/1 lane crossbar ONCE on the host.  Column mapping:
    #   source lane  k*(g*w) + r*w + ww   (k = i*s + j)
    #   dest   lane  r*(s*s*w) + i*(s*w) + ww*s + j
    src = np.arange(K)
    k_ = src // lin
    rem = src % lin
    r_, w_ = rem // w, rem % w
    i_, j_ = k_ // s, k_ % s
    dst = r_ * (s * s * w) + i_ * (s * w) + w_ * s + j_
    perm_np = np.zeros((K, K), dtype=np.float32)
    perm_np[src, dst] = 1.0
    perm = jnp.asarray(perm_np, dtype=mm_dtype)

    # Explicit scoped-VMEM sizing from the actual padded blocks.
    t_pad = _round_up(T, sub)
    in_blk = s * s * t_pad * _round_up(lin, 128) * x_it
    out_blk = t_pad * _round_up(K, 128) * x_it
    perm_blk = _round_up(K, 8) * _round_up(K, 128) * mm_it
    interm = 3 * t_pad * _round_up(K, 128) * mm_it
    need = 2 * perm_blk + 2 * (in_blk + out_blk) + interm
    vmem_limit = int(max(16 << 20, min(need + (8 << 20), 48 << 20), need + (2 << 20)))

    grid = (b, rows // T)
    out3 = pl.pallas_call(
        _expand_kernel,
        out_shape=jax.ShapeDtypeStruct((b, rows, K), x.dtype),
        grid=grid,
        in_specs=[
            # Constant block index -> crossbar stays resident in VMEM (no re-DMA).
            pl.BlockSpec((K, K), lambda bi, ti: (0, 0)),
            pl.BlockSpec((1, s * s, T, lin), lambda bi, ti: (bi, 0, ti, 0)),
        ],
        out_specs=pl.BlockSpec((1, T, K), lambda bi, ti: (bi, ti, 0)),
        compiler_params=pltpu.CompilerParams(
            dimension_semantics=("parallel", "parallel"),
            vmem_limit_bytes=vmem_limit),
    )(perm, x.reshape(b, s * s, rows, lin))

    # Free view back to the PyTorch output layout:
    # (b, c2*(h/g), s*s*g*w) == (b, c2, h/g, g, s, w, s) row-major == (b, c2, h*s, w*s).
    return out3.reshape(b, c2, h * s, w * s)


def expand_ref(x, gain=2):
    """Pure-JAX reference mirroring the PyTorch forward exactly."""
    b, c, h, w = x.shape
    s = gain
    y = x.reshape(b, s, s, c // s**2, h, w)
    y = jnp.transpose(y, (0, 3, 4, 1, 5, 2))
    return y.reshape(b, c // s**2, h * s, w * s)


if __name__ == "__main__":
    # Expand has no learnable parameters; only the `gain` hyperparameter.
    key = jax.random.PRNGKey(0)
    k1, k2, k3 = jax.random.split(key, 3)

    # Test 1: module-default small shape, f32 (default budget, grid split for megacore).
    x = jax.random.normal(k1, (2, 8, 16, 16), dtype=jnp.float32)
    out = jax.block_until_ready(expand(x, gain=2))
    ref = expand_ref(x, gain=2)
    assert out.shape == (2, 2, 32, 32), out.shape
    assert out.dtype == x.dtype
    assert jnp.allclose(out, ref, atol=1e-6, rtol=1e-6), "mismatch vs. reference (f32)"

    # Test 2: small VMEM budget to force a multi-row-tile grid.
    x2 = jax.random.normal(k2, (1, 16, 32, 16), dtype=jnp.float32)
    out2 = jax.block_until_ready(expand(x2, gain=2, block_bytes=64 * 1024))
    assert jnp.allclose(out2, expand_ref(x2, gain=2), atol=1e-6, rtol=1e-6), \
        "mismatch vs. reference (tiled grid)"

    # Test 3: bf16 stays in native dtype end-to-end (bf16 MXU accumulation) and is exact.
    x3 = jax.random.normal(k3, (2, 8, 16, 16)).astype(jnp.bfloat16)
    out3 = jax.block_until_ready(expand(x3, gain=2))
    assert out3.dtype == jnp.bfloat16
    assert jnp.array_equal(out3, expand_ref(x3, gain=2)), "mismatch vs. reference (bf16)"

    print("KERNEL_OK")
</pallas_src>

<mosaic_0001>
module attributes {stable_mosaic.version = 11 : i64} {
  func.func @_expand_kernel(%arg0: i32, %arg1: i32, %arg2: memref<128x128xf32, #tpu.memory_space<vmem>>, %arg3: memref<1x4x8x32xf32, #tpu.memory_space<vmem>>, %arg4: memref<1x8x128xf32, #tpu.memory_space<vmem>>) attributes {dimension_semantics = [#tpu.dimension_semantics<parallel>, #tpu.dimension_semantics<parallel>], iteration_bounds = array<i64: 2, 2>, scalar_prefetch = 0 : i64, scratch_operands = 0 : i64, tpu.core_type = #tpu.core_type<tc>, window_params = [{pipeline_mode = #tpu.pipeline_mode<synchronous>, transform_indices = @transform_0, window_bounds = array<i64: 128, 128>}, {transform_indices = @transform_1, window_bounds = array<i64: 1, 4, 8, 32>}, {transform_indices = @transform_2, window_bounds = array<i64: 1, 8, 128>}]} {
    %c0 = arith.constant 0 : index
    %c0_0 = arith.constant 0 : index
    %c0_1 = arith.constant 0 : index
    %c0_2 = arith.constant 0 : index
    %0 = vector.load %arg3[%c0, %c0_0, %c0_1, %c0_2] : memref<1x4x8x32xf32, #tpu.memory_space<vmem>>, vector<1x1x8x32xf32>
    %1 = vector.shape_cast %0 : vector<1x1x8x32xf32> to vector<8x32xf32>
    %c0_3 = arith.constant 0 : index
    %c1 = arith.constant 1 : index
    %c0_4 = arith.constant 0 : index
    %c0_5 = arith.constant 0 : index
    %2 = vector.load %arg3[%c0_3, %c1, %c0_4, %c0_5] : memref<1x4x8x32xf32, #tpu.memory_space<vmem>>, vector<1x1x8x32xf32>
    %3 = vector.shape_cast %2 : vector<1x1x8x32xf32> to vector<8x32xf32>
    %c0_6 = arith.constant 0 : index
    %c2 = arith.constant 2 : index
    %c0_7 = arith.constant 0 : index
    %c0_8 = arith.constant 0 : index
    %4 = vector.load %arg3[%c0_6, %c2, %c0_7, %c0_8] : memref<1x4x8x32xf32, #tpu.memory_space<vmem>>, vector<1x1x8x32xf32>
    %5 = vector.shape_cast %4 : vector<1x1x8x32xf32> to vector<8x32xf32>
    %c0_9 = arith.constant 0 : index
    %c3 = arith.constant 3 : index
    %c0_10 = arith.constant 0 : index
    %c0_11 = arith.constant 0 : index
    %6 = vector.load %arg3[%c0_9, %c3, %c0_10, %c0_11] : memref<1x4x8x32xf32, #tpu.memory_space<vmem>>, vector<1x1x8x32xf32>
    %7 = vector.shape_cast %6 : vector<1x1x8x32xf32> to vector<8x32xf32>
    %8 = tpu.concatenate %1, %3, %5, %7 in 1 : vector<8x32xf32>, vector<8x32xf32>, vector<8x32xf32>, vector<8x32xf32> -> vector<8x128xf32>
    %c0_12 = arith.constant 0 : index
    %c0_13 = arith.constant 0 : index
    %9 = vector.load %arg2[%c0_12, %c0_13] : memref<128x128xf32, #tpu.memory_space<vmem>>, vector<128x128xf32>
    %cst = arith.constant dense<0.000000e+00> : vector<8x128xf32>
    %10 = tpu.matmul %8, %9, %cst {dimension_numbers = #tpu.dot_dimension_numbers<[1], [0], [0], [1], [0, 0, 1, 1], [], []>} : vector<8x128xf32>, vector<128x128xf32>, vector<8x128xf32> -> vector<8x128xf32>
    %c0_14 = arith.constant 0 : index
    %c0_15 = arith.constant 0 : index
    %c0_16 = arith.constant 0 : index
    %11 = vector.load %arg4[%c0_14, %c0_15, %c0_16] : memref<1x8x128xf32, #tpu.memory_space<vmem>>, vector<1x8x128xf32>
    %12 = vector.shape_cast %11 : vector<1x8x128xf32> to vector<8x128xf32>
    %13 = vector.shape_cast %10 : vector<8x128xf32> to vector<1x8x128xf32>
    tpu.vector_store %arg4[%c0_14, %c0_15, %c0_16], %13 {strides = array<i32>} : memref<1x8x128xf32, #tpu.memory_space<vmem>>, vector<1x8x128xf32>,
    return
  }
  func.func @transform_0(%arg0: i32, %arg1: i32) -> (i32, i32) {
    %c0_i32 = arith.constant 0 : i32
    %c0_i32_0 = arith.constant 0 : i32
    %c0_i32_1 = arith.constant 0 : i32
    return %c0_i32, %c0_i32_0 : i32, i32
  }
  func.func @transform_1(%arg0: i32, %arg1: i32) -> (i32, i32, i32, i32) {
    %c0_i32 = arith.constant 0 : i32
    %c0_i32_0 = arith.constant 0 : i32
    %c0_i32_1 = arith.constant 0 : i32
    return %arg0, %c0_i32, %arg1, %c0_i32_0 : i32, i32, i32, i32
  }
  func.func @transform_2(%arg0: i32, %arg1: i32) -> (i32, i32, i32) {
    %c0_i32 = arith.constant 0 : i32
    %c0_i32_0 = arith.constant 0 : i32
    return %arg0, %arg1, %c0_i32 : i32, i32, i32
  }
}

</mosaic_0001>

<bundles_post_ra>
// kernel: tpu_custom_call.1
= control target key start
LH: loop header
LB: loop body
LE: loop exit
PB: predicated region body
PF: predicated region fallthrough
CT: control target
= control target key end

     0   :  { %s1054_s0 = inlined_call_operand.hbm [shape: f32[128,128], index: 0, kind: input, shape index: {}]   ;;  %s1055_s1 = inlined_call_operand.hbm [shape: f32[2,4,16,32], index: 1, kind: input, shape index: {}]   ;;  %s1056_s2 = inlined_call_operand.hbm [shape: f32[2,16,128], index: 2, kind: output, shape index: {}]  }
   0x1   :  { %1065 = sst [smem:[#allocation11_spill]] %s1054_s0 }
   0x2   :  { %7 = vsyncpa [#allocation3], 0 }
   0x3   :  { %8 = vsyncpa [#allocation6], 0 }
   0x4   :  { %10 = vsyncpa [#allocation6 + $0x1], 0 }
   0x5   :  { %11 = vsyncpa [#allocation4], 0 }
   0x6   :  { %13 = vsyncpa [#allocation4 + $0x1], 0  ;;  %s802_s9 = smov 0   ;;  %s804_s10 = smov 0  }
   0x7   :  { %s806_s11 = smov 0   ;;  %s808_s12 = smov 0  }
   0x8   :  { %s810_s13 = smov 0   ;;  %s812_s14 = smov 0  }
   0x9   :  { %s814_s15 = smov 0   ;;  %s816_s16 = smov 0  }
   0xa LB: > { %s419_s17 = sadd.s32 4294967295, %s773_s16   ;;  %s420_s18 = sadd.s32 4294967294, %s773_s16   ;;  %s773_s16 = sphi %s816_s16, %s19_s16   ;;  %s769_s15 = sphi %s814_s15, %s1090_s15   ;;  %s765_s14 = sphi %s812_s14, %s1089_s14   ;;  %s761_s13 = sphi %s810_s13, %s1088_s13   ;;  %s757_s12 = sphi %s808_s12, %s1087_s12   ;;  %s753_s11 = sphi %s806_s11, %s1086_s11   ;;  %s749_s10 = sphi %s804_s10, %s1085_s10   ;;  %s745_s9 = sphi %s802_s9, %s1084_s9  }
   0xb   : > { %p68_p0 = scmp.ne.s32.totalorder %s753_s11, %s749_s10  ;;  %p69_p1 = scmp.eq.s32.totalorder %s773_s16, 0 }
   0xc   : > { %p74_p2 = scmp.ne.s32.totalorder %s749_s10, %s745_s9  ;;  %p850_p3 = scmp.eq.s32.totalorder %s419_s17, 0 }
   0xd   : > { %p100_p4 = scmp.eq.s32.totalorder %s419_s17, 3  ;;  %p854_p5 = por %p69_p1, %p68_p0 }
   0xe   : > { %s1066_s20 = scalar_select %p850_p3, 1, 0 }
   0xf   : > { %p106_p6 = scmp.eq.s32.totalorder %s420_s18, 3  ;;  %p860_p7 = por %p850_p3, %p74_p2 }
  0x10   : > { %p864_p8 = por %p100_p4, %p68_p0  ;;  %p421_p10 = scmp.ge.s32.totalorder %s773_s16, 1 }
  0x11   : > { %s1068_s22 = scalar_select %p860_p7, 1, 0 }
  0x12   : > { %s1069_s23 = scalar_select %p864_p8, 1, 0 }
  0x13   : > { %p868_p9 = por %p106_p6, %p74_p2  ;;  %p113_p11 = scmp.lt.s32.totalorder %s773_s16, 5 }
  0x14   : > { %s775_s26 = smov [#allocation2]   ;;  %p536_p0 = scmp.lt.s32.totalorder %s773_s16, 4 }
  0x15   : > { %s1070_s24 = scalar_select %p868_p9, 1, 0 }
  0x16   : > { %p874_p12 = pnand %p421_p10, %p113_p11  ;;  %s125_s27 = sshll.u32 %s775_s26, 4  ;;  %s126_s27 = int_to_ptr.vmem [resolvable:$true] %s125_s27 }
  0x17   : > { %p889_p2 = pnand %p536_p0, %p854_p5  ;;  %s1074_s0 = sld [smem:[#allocation11_spill]] }
  0x18   : > { %s1071_s25 = scalar_select %p874_p12, 1, 0 }
  0x19   : > { %p523_p13 = pneg %p874_p12 }
  0x1a   : > { %s1073_s29 = scalar_select %p889_p2, 1, 0 }
  0x1b   : > { %p883_p1 = pnand %p523_p13, %p850_p3 }
  0x1d   : > { %s613_s4 = scalar_lea.hbm %s1074_s0, 2048  ;;  %p615_p6 = pneg %p883_p1 }
  0x1e   : > { %p614_p4 = scmp.ne.s32.totalorder %s1074_s0, %s613_s4  ;;  %p620_p13 = scmp.lt.u32.totalorder %s613_s4, %s1074_s0 }
  0x20   : > { %p616_p10 = pnand %p615_p6, %p614_p4 }
  0x22   : > { %p617_p11 = pneg %p616_p10 }
  0x24   : > { %p622_p5 = pnand %p620_p13, %p617_p11 }
  0x26   : > { %625 = shalt.err (!%p622_p5)
}
  0x27   : > { %s626_s17 = scalar_lea.vmem %s126_s27, 2048  ;;  %p634_p7 = scmp.lt.s32.totalorder %s126_s27, %s126_s27 }
  0x28   : > { %p627_p0 = scmp.ne.s32.totalorder %s126_s27, %s626_s17  ;;  %p635_p3 = scmp.lt.s32.totalorder %s626_s17, %s626_s17 }
  0x2a   : > { %p629_p9 = pnand %p627_p0, %p615_p6  ;;  %p636_p12 = por %p635_p3, %p634_p7 }
  0x2c   : > { %p630_p8 = pneg %p629_p9 }
  0x2e   : > { %p637_p2 = pnand %p636_p12, %p630_p8 }
  0x30   : > { %640 = shalt.err (!%p637_p2)
}
  0x31   : > { %s1063_s18 = smov 128   ;;  %s1064_s21 = smov 8  }
  0x32   : > { %526 = dma.hbm_to_vmem [thread:$0]  (!%p883_p1), %s1074_s0, 2048, %s126_s27, [#allocation3], %s1063_s18, %s1063_s18, %s1064_s21  }
  0x33   : > { %s28_s3 = sadd.s32 1, %s765_s14  ;;  %s31_s4 = sadd.s32 1, %s769_s15 }
  0x34   : > { %p29_p3 = scmp.ge.s32.totalorder %s28_s3, 2  ;;  %s139_s5 = sand.u32 1, %s753_s11  }
  0x35   : > { %s425_s6 = sshll.u32 %s769_s15, 3  ;;  %s424_s28 = sshll.u32 %s139_s5, 5 }
  0x36   : > { %s1092_s3 = smov (%p29_p3, %s28_s3), 0  ;;  %s1094_s4 = smov (!%p29_p3, %s31_s4), %s769_s15 }
  0x37   : > { %s57_s7 = ssub.s32 %s765_s14, %s1092_s3  ;;  %p33_p7 = scmp.ge.s32.totalorder %s1094_s4, 2 }
  0x38   : > { %s148_s8 = sadd.s32 %s765_s14, %s425_s6  ;;  %s143_s17 = scalar_lea.vmem [#allocation5], %s424_s28 }
  0x39   : > { %s1096_s4 = smov (%p33_p7, %s1094_s4), 0  ;;  %s426_s27 = sshll.u32 %s148_s8, 7 }
  0x3a   : > { %s151_s26 = sshll.u32 %s143_s17, 4  ;;  %s56_s30 = ssub.s32 %s769_s15, %s1096_s4  ;;  %s933_s26 = int_to_ptr.vmem [resolvable:$true] %s151_s26 }
  0x3b   : > { %s929_s21 = scalar_lea.hbm %s1055_s1, %s426_s27  ;;  %s931_s0 = sor.u32 %s57_s7, %s56_s30 }
  0x3c   : > { %p59_p8 = scmp.eq.s32.totalorder %s931_s0, 0  ;;  %s936_s6 = scalar_lea.sflag [#allocation6], %s139_s5 }
  0x3d   : > { %s641_s28 = scalar_lea.hbm %s929_s21, 512  ;;  %p1075_p12 = scmp.ne.s32.totalorder %s1073_s29, 0 }
  0x3e   : > { %p642_p9 = scmp.ne.s32.totalorder %s929_s21, %s641_s28  ;;  %s646_s8 = scalar_lea.hbm %s1055_s1, 2048 }
  0x3f   : > { %p643_p1 = pneg %p1075_p12  ;;  %p647_p6 = scmp.lt.u32.totalorder %s929_s21, %s1055_s1 }
  0x40   : > { %p648_p10 = scmp.lt.u32.totalorder %s646_s8, %s641_s28  ;;  %p650_p13 = scmp.lt.u32.totalorder %s641_s28, %s929_s21 }
  0x41   : > { %p644_p2 = pnand %p643_p1, %p642_p9 }
  0x42   : > { %p649_p11 = por %p648_p10, %p647_p6 }
  0x43   : > { %p645_p4 = pneg %p644_p2 }
  0x44   : > { %p651_p5 = por %p650_p13, %p649_p11 }
  0x46   : > { %p652_p0 = pnand %p651_p5, %p645_p4 }
  0x48   : > { %655 = shalt.err (!%p652_p0)
}
  0x49   : > { %s656_s5 = scalar_lea.vmem %s933_s26, 512  ;;  %s778_s17 = smov [#allocation5]  }
  0x4a   : > { %p657_p3 = scmp.ne.s32.totalorder %s933_s26, %s656_s5  ;;  %s661_s30 = sshll.u32 %s778_s17, 4  ;;  %s662_s30 = int_to_ptr.vmem [resolvable:$false] %s661_s30 }
  0x4b   : > { %s663_s19 = scalar_lea.vmem %s662_s30, 1024  ;;  %p664_p2 = scmp.lt.s32.totalorder %s933_s26, %s662_s30 }
  0x4c   : > { %p659_p7 = pnand %p657_p3, %p643_p1  ;;  %p665_p6 = scmp.lt.s32.totalorder %s663_s19, %s656_s5 }
  0x4e   : > { %p660_p9 = pneg %p659_p7  ;;  %p666_p10 = por %p665_p6, %p664_p2 }
  0x50   : > { %p667_p11 = pnand %p666_p10, %p660_p9 }
  0x52   : > { %670 = shalt.err (!%p667_p11)
}
  0x53   : > { %s779_s28 = smov 256   ;;  %s1076_s18 = smov 8  }
  0x54   : > { %s1077_s8 = smov 128   ;;  %s1078_s7 = sadd.s32 1, %s753_s11 }
  0x55   : > { %530 = dma.hbm_to_vmem [thread:$0]  (!%p1075_p12), %s929_s21, 512, %s933_s26, %s936_s6, %s779_s28, %s1077_s8, %s1076_s18  }
  0x56   : > { %s971_s27 = scalar_select %p59_p8, %s753_s11, %s1078_s7  }
  0x57   : > { %p1079_p1 = scmp.ne.s32.totalorder %s1071_s25, 0 }
  0x58   : > { %p1080_p4 = scmp.ne.s32.totalorder (!%p1079_p1), %s1066_s20, 0 }
  0x59   : > { %163 = sbr.rel (%p1079_p1) target bundleno = 450 (0x1c2), region = 28 }
  0x60   : > { %732 = dma.done.wait (%p1080_p4), [#allocation3], 2048  }
  0x61   : > { %734 = vsyncadd (%p1080_p4), [#allocation3], 4294965248  ;;  %s980_s29 = sand.u32 1, %s749_s10   ;;  %p1081_p8 = scmp.ne.s32.totalorder %s1068_s22, 0 }
  0x62   : > { %s429_s21 = sshll.u32 %s980_s29, 5  ;;  %s170_s26 = scalar_lea.sflag [#allocation6], %s980_s29 }
  0x63   : > { %s984_s0 = scalar_lea.vmem [#allocation5], %s429_s21 }
  0x64   : > { %736 = dma.done.wait (%p1081_p8), %s170_s26, 512  }
  0x65   : > { %738 = vsyncadd (%p1081_p8), %s170_s26, 4294966784  ;;  %v780_v0 = vmov 0.0|0.0   ;;  %vm781_vm0 = vmmov 0   ;;  %v782_v1 = vmov 0.0   ;;  %v431_v2 = vld [vmem:[%s984_s0 + $0x8] sm:$0xff]  ;;  %v433_v3 = vld [vmem:[%s984_s0 + $0x18] sm:$0xff] }
  0x66   : > { %491 = vmatprep.subr.bf16.mxu0 %v780_v0  ;;  %488 = vmatprep.mubr.msk.f32.mxu0 %vm781_vm0, %v782_v1  ;;  %s783_s20 = smov 32   ;;  %s784_s25 = smov 96   ;;  %v219_v4 = vld [vmem:[#allocation2] sm:$0xff]  ;;  %v220_v5 = vld [vmem:[#allocation2 + $0x8] sm:$0xff]  ;;  %v221_v6 = vld [vmem:[#allocation2 + $0x10] sm:$0xff]  ;;  %vm213_vm1 = vcmask 261120  }
  0x67   : > { %202 = vrot.lane.b32.xlu0 %v431_v2, %s783_s20  ;;  %210 = vrot.lane.b32.xlu1 %v433_v3, %s784_s25  ;;  %v432_v7 = vld [vmem:[%s984_s0 + $0x10] sm:$0xff]  ;;  %v492_v8 = vpack.c.bf16 %v220_v5, %v219_v4  ;;  %v222_v9 = vld [vmem:[#allocation2 + $0x18] sm:$0xff]  ;;  %s785_s22 = smov 64   ;;  %v223_v11 = vld [vmem:[#allocation2 + $0x20] sm:$0xff]  ;;  %vm215_vm2 = vcmask 523264   ;;  %vm217_vm3 = vcmask 785408  }
  0x68   : > { %v495_v10 = vpack.c.bf16 %v222_v9, %v221_v6  ;;  %v224_v12 = vld [vmem:[#allocation2 + $0x28] sm:$0xff]  ;;  %v225_v14 = vld [vmem:[#allocation2 + $0x30] sm:$0xff]  ;;  %v226_v15 = vld [vmem:[#allocation2 + $0x38] sm:$0xff]  ;;  %s430_s6 = sshll.u32 %s980_s29, 3  ;;  %s435_s5 = sshll.u32 %s761_s13, 1 }
  0x69   : > { %493 = vmatpush3.bf16.msra.mxu0 %v492_v8  ;;  %v498_v13 = vpack.c.bf16 %v224_v12, %v223_v11  ;;  %v501_v16 = vpack.c.bf16 %v226_v15, %v225_v14  ;;  %v227_v17 = vld [vmem:[#allocation2 + $0x40] sm:$0xff]  ;;  %v228_v18 = vld [vmem:[#allocation2 + $0x48] sm:$0xff]  ;;  %v229_v20 = vld [vmem:[#allocation2 + $0x50] sm:$0xff]  ;;  %s318_s17 = sadd.s32 %s757_s12, %s435_s5  ;;  %s193_s30 = scalar_lea.vmem [#allocation7], %s430_s6 }
  0x6a   : > { %494 = vmatprep.subr.bf16.mxu0 %v780_v0  ;;  %v504_v19 = vpack.c.bf16 %v228_v18, %v227_v17  ;;  %v230_v21 = vld [vmem:[#allocation2 + $0x58] sm:$0xff]  ;;  %v231_v23 = vld [vmem:[#allocation2 + $0x60] sm:$0xff]  ;;  %v232_v24 = vld [vmem:[#allocation2 + $0x68] sm:$0xff]  ;;  %s322_s19 = sshll.u32 %s193_s30, 4  ;;  %s436_s28 = sshll.u32 %s318_s17, 7  ;;  %s997_s19 = int_to_ptr.vmem [resolvable:$true] %s322_s19 }
  0x6b   : > { %206 = vrot.lane.b32.xlu0 %v432_v7, %s785_s22  ;;  %v507_v22 = vpack.c.bf16 %v230_v21, %v229_v20  ;;  %v510_v25 = vpack.c.bf16 %v232_v24, %v231_v23  ;;  %v233_v26 = vld [vmem:[#allocation2 + $0x70] sm:$0xff]  ;;  %v234_v27 = vld [vmem:[#allocation2 + $0x78] sm:$0xff]  ;;  %v194_v30 = vld [vmem:[%s984_s0] sm:$0xff]  ;;  %s1002_s7 = scalar_lea.hbm %s1056_s2, %s436_s28  ;;  %s307_s21 = scalar_lea.sflag [#allocation4], %s980_s29 }
  0x6c   : > { %v513_v28 = vpack.c.bf16 %v234_v27, %v233_v26  ;;  %s671_s26 = scalar_lea.vmem %s997_s19, 128  ;;  %p1082_p13 = scmp.ne.s32.totalorder %s1069_s23, 0 }
  0x6d   : > { %496 = vmatpush3.bf16.msra.mxu0 %v495_v10  ;;  %p672_p12 = scmp.ne.s32.totalorder %s997_s19, %s671_s26  ;;  %s786_s12 = smov [#allocation7]  }
  0x6e   : > { %497 = vmatprep.subr.bf16.mxu0 %v780_v0  ;;  %s675_s13 = sshll.u32 %s786_s12, 4  ;;  %s676_s13 = int_to_ptr.vmem [resolvable:$false] %s675_s13 }
  0x6f   : > { %p673_p5 = pnand %p672_p12, %p1082_p13  ;;  %s677_s0 = scalar_lea.vmem %s676_s13, 256 }
  0x70   : > { %p678_p3 = scmp.lt.s32.totalorder %s997_s19, %s676_s13  ;;  %p679_p7 = scmp.lt.s32.totalorder %s677_s0, %s671_s26 }
  0x71   : > { %499 = vmatpush3.bf16.msra.mxu0 %v498_v13  ;;  %p674_p0 = pneg %p673_p5 }
  0x72   : > { %500 = vmatprep.subr.bf16.mxu0 %v780_v0  ;;  %p680_p9 = por %p679_p7, %p678_p3 }
  0x74   : > { %p681_p2 = pnand %p680_p9, %p674_p0 }
  0x75   : > { %502 = vmatpush3.bf16.msra.mxu0 %v501_v16 }
  0x76   : > { %503 = vmatprep.subr.bf16.mxu0 %v780_v0 }
  0x79   : > { %505 = vmatpush3.bf16.msra.mxu0 %v504_v19 }
  0x7a   : > { %506 = vmatprep.subr.bf16.mxu0 %v780_v0 }
  0x7d   : > { %508 = vmatpush3.bf16.msra.mxu0 %v507_v22 }
  0x7e   : > { %509 = vmatprep.subr.bf16.mxu0 %v780_v0 }
  0x81   : > { %511 = vmatpush3.bf16.msra.mxu0 %v510_v25 }
  0x82   : > { %512 = vmatprep.subr.bf16.mxu0 %v780_v0 }
  0x85   : > { %514 = vmatpush3.bf16.msra.mxu0 %v513_v28 }
  0xd9   : > { %v203_v29 = vpop.permute.xlu0 %202  ;;  %v211_v31 = vpop.permute.xlu1 %210 }
  0xda   : > { %v214_v32 = vsel %vm213_vm1, %v194_v30, %v203_v29 }
  0xdd   : > { %v207_v33 = vpop.permute.xlu0 %206 }
  0xde   : > { %v216_v34 = vsel %vm215_vm2, %v214_v32, %v207_v33 }
  0xdf   : > { %v218_v35 = vsel %vm217_vm3, %v216_v34, %v211_v31 }
  0xe0   : > { %489 = vmatmul.mubr.f32.vlgmr.msra.gmra.mrb[0].mxu0 %v218_v35 }
 0x1b3   : > { %v301_v36 = vpop.f32.mrb[0].mxu0 }
 0x1b4   : > { %305 = vst [vmem:[%s193_s30] sm:$0xff] %v301_v36  ;;  %v490_v37 = vpop.f32.mrb[1].mxu0 }
 0x1b5   : > { %684 = shalt.err (!%p681_p2)
}
 0x1b6   : > { %s685_s29 = scalar_lea.hbm %s1002_s7, 128  ;;  %s689_s22 = scalar_lea.hbm %s1056_s2, 512 }
 0x1b7   : > { %p686_p6 = scmp.ne.s32.totalorder %s1002_s7, %s685_s29  ;;  %p690_p1 = scmp.lt.u32.totalorder %s1002_s7, %s1056_s2 }
 0x1b8   : > { %p691_p4 = scmp.lt.u32.totalorder %s689_s22, %s685_s29  ;;  %p693_p12 = scmp.lt.u32.totalorder %s685_s29, %s1002_s7 }
 0x1b9   : > { %p687_p10 = pnand %p686_p6, %p1082_p13 }
 0x1ba   : > { %p692_p8 = por %p691_p4, %p690_p1 }
 0x1bb   : > { %p688_p11 = pneg %p687_p10 }
 0x1bc   : > { %p694_p5 = por %p693_p12, %p692_p8 }
 0x1be   : > { %p695_p0 = pnand %p694_p5, %p688_p11 }
 0x1c0   : > { %698 = shalt.err (!%p695_p0)
}
 0x1c1   : > { %521 = dma.vmem_to_hbm [thread:$0]  (%p1082_p13), %s997_s19, 128, %s1002_s7, %s307_s21  }
 0x1c2 PF: > { %p538_p3 = scmp.ge.s32.totalorder %s773_s16, 2  ;;  %s334_s17 = sand.u32 1, %s745_s9  }
 0x1c3   : > { %p1083_p7 = scmp.ne.s32.totalorder %s1070_s24, 0  ;;  %s335_s30 = scalar_lea.sflag [#allocation4], %s334_s17 }
 0x1c5   : > { %p532_p9 = pnand %p538_p3, %p1083_p7 }
 0x1c7   : > { %740 = dma.done.wait (!%p532_p9), %s335_s30, 128  }
 0x1c8   : > { %742 = vsyncadd (!%p532_p9), %s335_s30, 4294967168  ;;  %s19_s16 = sadd.s32 1, %s773_s16   ;;  %s1084_s9 = smov %s749_s10 }
 0x1c9   : > { %p16_p2 = scmp.ge.s32.totalorder %s19_s16, 6   ;;  %s1085_s10 = smov %s753_s11 }
 0x1ca   : > { %s1086_s11 = smov %s971_s27  ;;  %s1087_s12 = smov %s765_s14 }
 0x1cb   : > { %s1088_s13 = smov %s769_s15  ;;  %s1089_s14 = smov %s1092_s3 }
 0x1cc   : > { %s1090_s15 = smov %s1096_s4  ;;  %18 = sbr.rel (!%p16_p2) target bundleno = 10 (0xa), region = 81 }
 0x1d3   :  { %340 = vsyncpa [#allocation3], 1 }
 0x1d4   :  { %342 = vsyncpa [#allocation3 + $0x1], 1 }
 0x1d5   :  { %343 = vsyncpa [#allocation6], 1 }
 0x1d6   :  { %345 = vsyncpa [#allocation6 + $0x1], 1 }
 0x1d7   :  { %346 = vsyncpa [#allocation4], 1 }
 0x1d8   :  { %348 = vsyncpa [#allocation4 + $0x1], 1 }

</bundles_post_ra>
